<compile_context>
chip_gen: v7x
topology: tpu7x:2x2x1
jax: 0.10.0
libtpu: 0.0.40
codegen_flags: <defaults>
</compile_context>

<pallas_src>
import functools
from itertools import permutations

import numpy as np
import jax
import jax.numpy as jnp
from jax import lax
from jax.experimental import pallas as pl
from jax.experimental.pallas import tpu as pltpu

# Logit used to pad the time axis: softplus(-1e4) underflows to exactly 0 in
# f32 and the paired target pad is 0, so padded frames contribute zero loss and
# the mean keeps dividing by the *real* sequence length.
_PAD_LOGIT = -1.0e4


def _round_up(x: int, m: int) -> int:
    return ((x + m - 1) // m) * m


def _pairwise_bce_kernel(x_ref, y_ref, out_ref, *, inv_t):
    """One lane-packed group.

    x_ref, y_ref : (1, T_pad, LANE) bf16 -- Bb batch elements packed along lanes
    out_ref      : (1, LANE, LANE) f32  -- out[m, n] = mean_t BCE(x[t, m], y[t, n])
    """
    x_bf = x_ref[0]
    y_bf = y_ref[0]
    x = x_bf.astype(jnp.float32)

    # Numerically stable softplus, in f32 (bf16 is only used for HBM traffic).
    sp = jnp.maximum(x, 0.0) + jnp.log1p(jnp.exp(-jnp.abs(x)))

    dn = (((0,), (0,)), ((), ()))  # contract over time (axis 0 of both operands)
    # colsum(softplus) broadcast across all output lanes via an all-ones RHS:
    # single full-width MXU contraction, no narrow intermediate, no transpose.
    sp_sum = lax.dot_general(sp, jnp.ones_like(sp), dn,
                             preferred_element_type=jnp.float32)
    # Pairwise cross term sum_t x[t,m] * y[t,n]: bf16 operands, f32 accumulate.
    xty = lax.dot_general(x_bf, y_bf, dn, preferred_element_type=jnp.float32)

    out_ref[0] = (sp_sum - xty) * inv_t


def pairwise_bce(pred, tgt, t_valid=None, lane_target=128):
    """pred, tgt: (B, T, S) -> (B, S, S), L[b,i,j] = mean_t BCE(pred[b,t,i], tgt[b,t,j]).

    The mean divides by `t_valid` (default T); padded frames use logit=_PAD_LOGIT
    and target 0, contributing exactly zero.  lane_target=128 fits all of
    v5e/v6e/v7x; 256 is also legal on v6e/v7x.
    """
    B, T, S = pred.shape
    if t_valid is None:
        t_valid = T

    # Lane packing: Bb batch elements side by side so Bb*S ~= lane_target lanes.
    bb = max(1, lane_target // S)
    bb = min(bb, B)
    lane = _round_up(bb * S, 128)
    groups = (B + bb - 1) // bb
    b_pad = groups * bb
    t_pad = _round_up(T, 8)

    x = pred.astype(jnp.bfloat16)
    y = tgt.astype(jnp.bfloat16)          # targets are 0/1 -> lossless in bf16
    x = jnp.pad(x, ((0, b_pad - B), (0, t_pad - T), (0, 0)),
                constant_values=_PAD_LOGIT)
    y = jnp.pad(y, ((0, b_pad - B), (0, t_pad - T), (0, 0)))

    # (b_pad, t_pad, S) -> (groups, t_pad, bb*S): batch packed along lanes.
    x = x.reshape(groups, bb, t_pad, S).transpose(0, 2, 1, 3).reshape(groups, t_pad, bb * S)
    y = y.reshape(groups, bb, t_pad, S).transpose(0, 2, 1, 3).reshape(groups, t_pad, bb * S)
    if lane > bb * S:
        x = jnp.pad(x, ((0, 0), (0, 0), (0, lane - bb * S)))
        y = jnp.pad(y, ((0, 0), (0, 0), (0, lane - bb * S)))

    kernel = functools.partial(_pairwise_bce_kernel, inv_t=1.0 / float(t_valid))
    # Per-step VMEM: 2 inputs x 2 pipeline buffers x (t_pad*lane*2B) + a few f32
    # temporaries ~= a few MiB for T ~ 1000 -> fits the 32 MiB scoped default on
    # v5e/v6e/v7x, so no vmem_limit override is needed.
    full = pl.pallas_call(
        kernel,
        out_shape=jax.ShapeDtypeStruct((groups, lane, lane), jnp.float32),
        grid=(groups,),
        in_specs=[
            pl.BlockSpec((1, t_pad, lane), lambda g: (g, 0, 0)),
            pl.BlockSpec((1, t_pad, lane), lambda g: (g, 0, 0)),
        ],
        out_specs=pl.BlockSpec((1, lane, lane), lambda g: (g, 0, 0)),
        compiler_params=pltpu.CompilerParams(
            dimension_semantics=("parallel",)),   # batch groups split across TCs
    )(x, y)

    # Extract the per-batch diagonal SxS blocks of the lane-packed result.
    v = full[:, :bb * S, :bb * S].reshape(groups, bb, S, bb, S)
    d = jnp.diagonal(v, axis1=1, axis2=3)          # (groups, S, S, bb)
    return jnp.moveaxis(d, -1, 1).reshape(groups * bb, S, S)[:B]


def pit_loss(pred_frames_out, targets, mask=None):
    """JAX/Pallas equivalent of PitLoss.forward (mask=None path).

    pred_frames_out : (B, T_pred, C) float logits
    targets         : list of (T_i, S_i) 0/1 label matrices
    Returns (mean best-permutation loss, best permutation index per batch elem).
    """
    # TODO(synk): masked reduction branch (mask is not None) not implemented;
    # the PyTorch reference defaults to mask=None.
    assert mask is None

    n_speakers = [t.shape[1] for t in targets]
    S = max(n_speakers)
    max_len = max(t.shape[0] for t in targets)
    tgt = jnp.stack([
        jnp.pad(jnp.asarray(t, jnp.float32),
                ((0, max_len - t.shape[0]), (0, S - t.shape[1])))
        for t in targets
    ])                                              # (B, max_len, S)

    select_seq_len = min(max_len, pred_frames_out.shape[1])
    pred_s = pred_frames_out[:, :select_seq_len, :S]
    tgt_s = tgt[:, :select_seq_len, :]

    # Hot path: pairwise per-speaker mean BCE on TPU via Pallas.
    L = pairwise_bce(pred_s, tgt_s, t_valid=select_seq_len)   # (B, S, S)

    # Cheap glue: score all S! permutations, pick the best per batch element.
    perms = np.array(list(permutations(range(S))), dtype=np.int32)   # (P, S)
    idx = np.arange(S, dtype=np.int32)
    per_perm = L[:, idx[None, :], perms].mean(axis=2)                # (B, P)
    best_vals = jnp.min(per_perm, axis=1)
    best_idx = jnp.argmin(per_perm, axis=1)
    return best_vals.mean(), best_idx


def _pit_loss_ref(pred_frames_out, targets):
    """Pure-JAX elementwise reference, used only for validation."""
    n_speakers = [t.shape[1] for t in targets]
    S = max(n_speakers)
    max_len = max(t.shape[0] for t in targets)
    tgt = jnp.stack([
        jnp.pad(jnp.asarray(t, jnp.float32),
                ((0, max_len - t.shape[0]), (0, S - t.shape[1])))
        for t in targets
    ])
    T = min(max_len, pred_frames_out.shape[1])
    x = pred_frames_out[:, :T, :S].astype(jnp.float32)
    y = tgt[:, :T, :]
    sp = jnp.maximum(x, 0.0) + jnp.log1p(jnp.exp(-jnp.abs(x)))
    bce = sp[:, :, :, None] - x[:, :, :, None] * y[:, :, None, :]    # (B,T,S,S)
    L = bce.mean(axis=1)
    perms = np.array(list(permutations(range(S))), dtype=np.int32)
    per_perm = L[:, np.arange(S)[None, :], perms].mean(axis=2)
    return jnp.min(per_perm, axis=1).mean(), jnp.argmin(per_perm, axis=1)


if __name__ == "__main__":
    key = jax.random.PRNGKey(0)
    k1, k2, k3 = jax.random.split(key, 3)

    B, T, S = 2, 8, 4
    pred = jax.random.normal(k1, (B, T, S), dtype=jnp.float32)
    # Ragged speaker counts (3 and 4 speakers) to exercise the padding glue.
    t0 = (jax.random.uniform(k2, (T, 3)) > 0.5).astype(jnp.float32)
    t1 = (jax.random.uniform(k3, (T, S)) > 0.5).astype(jnp.float32)
    targets = [t0, t1]

    loss, best_perm_idx = pit_loss(pred, targets)
    jax.block_until_ready((loss, best_perm_idx))

    ref_loss, _ = _pit_loss_ref(pred, targets)
    # bf16 input rounding (~0.4% relative on logits) -> loose tolerance.
    assert abs(float(loss) - float(ref_loss)) < 2e-2, (float(loss), float(ref_loss))
    print("KERNEL_OK")
</pallas_src>

<mosaic_0001>
module attributes {stable_mosaic.version = 11 : i64} {
  func.func @_pairwise_bce_kernel(%arg0: i32, %arg1: memref<1x8x128xbf16, #tpu.memory_space<vmem>>, %arg2: memref<1x8x128xbf16, #tpu.memory_space<vmem>>, %arg3: memref<1x128x128xf32, #tpu.memory_space<vmem>>) attributes {dimension_semantics = [#tpu.dimension_semantics<parallel>], iteration_bounds = array<i64: 1>, scalar_prefetch = 0 : i64, scratch_operands = 0 : i64, tpu.core_type = #tpu.core_type<tc>, window_params = [{transform_indices = @transform_0, window_bounds = array<i64: 1, 8, 128>}, {transform_indices = @transform_1, window_bounds = array<i64: 1, 8, 128>}, {transform_indices = @transform_2, window_bounds = array<i64: 1, 128, 128>}]} {
    %c0 = arith.constant 0 : index
    %c0_0 = arith.constant 0 : index
    %c0_1 = arith.constant 0 : index
    %0 = vector.load %arg1[%c0, %c0_0, %c0_1] : memref<1x8x128xbf16, #tpu.memory_space<vmem>>, vector<1x8x128xbf16>
    %1 = vector.shape_cast %0 : vector<1x8x128xbf16> to vector<8x128xbf16>
    %c0_2 = arith.constant 0 : index
    %c0_3 = arith.constant 0 : index
    %c0_4 = arith.constant 0 : index
    %2 = vector.load %arg2[%c0_2, %c0_3, %c0_4] : memref<1x8x128xbf16, #tpu.memory_space<vmem>>, vector<1x8x128xbf16>
    %3 = vector.shape_cast %2 : vector<1x8x128xbf16> to vector<8x128xbf16>
    %4 = arith.extf %1 : vector<8x128xbf16> to vector<8x128xf32>
    %cst = arith.constant 0.000000e+00 : f32
    %5 = vector.broadcast %cst : f32 to vector<8x128xf32>
    %6 = arith.maximumf %4, %5 : vector<8x128xf32>
    %7 = math.absf %4 : vector<8x128xf32>
    %cst_5 = arith.constant 0.000000e+00 : f32
    %8 = vector.broadcast %cst_5 : f32 to vector<8x128xf32>
    %9 = arith.subf %8, %7 : vector<8x128xf32>
    %10 = math.exp %9 : vector<8x128xf32>
    %11 = math.log1p %10 : vector<8x128xf32>
    %12 = arith.addf %6, %11 : vector<8x128xf32>
    %cst_6 = arith.constant 1.000000e+00 : f32
    %13 = vector.broadcast %cst_6 : f32 to vector<8x128xf32>
    %cst_7 = arith.constant dense<0.000000e+00> : vector<128x128xf32>
    %14 = tpu.matmul %12, %13, %cst_7 {dimension_numbers = #tpu.dot_dimension_numbers<[0], [0], [1], [1], [0, 1, 1, 1], [], []>} : vector<8x128xf32>, vector<8x128xf32>, vector<128x128xf32> -> vector<128x128xf32>
    %cst_8 = arith.constant dense<0.000000e+00> : vector<128x128xf32>
    %15 = tpu.matmul %1, %3, %cst_8 {dimension_numbers = #tpu.dot_dimension_numbers<[0], [0], [1], [1], [0, 1, 1, 1], [], []>} : vector<8x128xbf16>, vector<8x128xbf16>, vector<128x128xf32> -> vector<128x128xf32>
    %16 = arith.subf %14, %15 : vector<128x128xf32>
    %cst_9 = arith.constant 1.250000e-01 : f32
    %17 = vector.broadcast %cst_9 : f32 to vector<128x128xf32>
    %18 = arith.mulf %16, %17 : vector<128x128xf32>
    %c0_10 = arith.constant 0 : index
    %c0_11 = arith.constant 0 : index
    %c0_12 = arith.constant 0 : index
    %19 = vector.load %arg3[%c0_10, %c0_11, %c0_12] : memref<1x128x128xf32, #tpu.memory_space<vmem>>, vector<1x128x128xf32>
    %20 = vector.shape_cast %19 : vector<1x128x128xf32> to vector<128x128xf32>
    %21 = vector.shape_cast %18 : vector<128x128xf32> to vector<1x128x128xf32>
    tpu.vector_store %arg3[%c0_10, %c0_11, %c0_12], %21 {strides = array<i32>} : memref<1x128x128xf32, #tpu.memory_space<vmem>>, vector<1x128x128xf32>,
    return
  }
  func.func @transform_0(%arg0: i32) -> (i32, i32, i32) {
    %c0_i32 = arith.constant 0 : i32
    %c0_i32_0 = arith.constant 0 : i32
    %c0_i32_1 = arith.constant 0 : i32
    return %arg0, %c0_i32, %c0_i32_0 : i32, i32, i32
  }
  func.func @transform_1(%arg0: i32) -> (i32, i32, i32) {
    %c0_i32 = arith.constant 0 : i32
    %c0_i32_0 = arith.constant 0 : i32
    %c0_i32_1 = arith.constant 0 : i32
    return %arg0, %c0_i32, %c0_i32_0 : i32, i32, i32
  }
  func.func @transform_2(%arg0: i32) -> (i32, i32, i32) {
    %c0_i32 = arith.constant 0 : i32
    %c0_i32_0 = arith.constant 0 : i32
    %c0_i32_1 = arith.constant 0 : i32
    return %arg0, %c0_i32, %c0_i32_0 : i32, i32, i32
  }
}

</mosaic_0001>

<bundles_post_ra>
// kernel: tpu_custom_call.1
= control target key start
LH: loop header
LB: loop body
LE: loop exit
PB: predicated region body
PF: predicated region fallthrough
CT: control target
= control target key end

     0   :  { %7 = vsyncpa [#allocation3], 0  ;;  %s754_s0 = inlined_call_operand.hbm [shape: bf16[1,8,128], index: 0, kind: input, shape index: {}]   ;;  %s755_s1 = inlined_call_operand.hbm [shape: bf16[1,8,128], index: 1, kind: input, shape index: {}]   ;;  %s756_s2 = inlined_call_operand.hbm [shape: f32[1,128,128], index: 2, kind: output, shape index: {}]  }
   0x1   :  { %8 = vsyncpa [#allocation6], 0 }
   0x2   :  { %9 = vsyncpa [#allocation4], 0  ;;  %s667_s9 = smov [#allocation2]   ;;  %s668_s11 = smov [#allocation5]  }
   0x3   :  { %s16_s10 = sshll.u32 %s667_s9, 4  ;;  %s26_s12 = sshll.u32 %s668_s11, 4  ;;  %s17_s10 = int_to_ptr.vmem [resolvable:$true] %s16_s10  ;;  %s27_s12 = int_to_ptr.vmem [resolvable:$true] %s26_s12 }
   0x4   :  { %s595_s15 = scalar_lea.hbm %s754_s0, 64 }
   0x5   :  { %p596_p0 = scmp.ne.s32.totalorder %s754_s0, %s595_s15  ;;  %p599_p1 = scmp.lt.u32.totalorder %s595_s15, %s754_s0 }
   0x7   :  { %p601_p2 = pnand %p599_p1, %p596_p0 }
   0x9   :  { %604 = shalt.err (!%p601_p2)
}
   0xa   :  { %s605_s20 = scalar_lea.vmem %s17_s10, 64  ;;  %p610_p4 = scmp.lt.s32.totalorder %s17_s10, %s17_s10 }
   0xb   :  { %p606_p3 = scmp.ne.s32.totalorder %s17_s10, %s605_s20  ;;  %p611_p5 = scmp.lt.s32.totalorder %s605_s20, %s605_s20 }
   0xd   :  { %p612_p6 = por %p611_p5, %p610_p4 }
   0xf   :  { %p613_p7 = pnand %p612_p6, %p606_p3 }
  0x11   :  { %616 = shalt.err (!%p613_p7)
}
  0x12   :  { %19 = dma.hbm_to_vmem [thread:$0]  %s754_s0, 64, %s17_s10, [#allocation3]  }
  0x13   :  { %s617_s25 = scalar_lea.hbm %s755_s1, 64 }
  0x14   :  { %p618_p8 = scmp.ne.s32.totalorder %s755_s1, %s617_s25  ;;  %p621_p9 = scmp.lt.u32.totalorder %s617_s25, %s755_s1 }
  0x16   :  { %p623_p10 = pnand %p621_p9, %p618_p8 }
  0x18   :  { %626 = shalt.err (!%p623_p10)
}
  0x19   :  { %s627_s30 = scalar_lea.vmem %s27_s12, 64  ;;  %p632_p12 = scmp.lt.s32.totalorder %s27_s12, %s27_s12 }
  0x1a   :  { %p628_p11 = scmp.ne.s32.totalorder %s27_s12, %s627_s30  ;;  %p633_p13 = scmp.lt.s32.totalorder %s627_s30, %s627_s30 }
  0x1c   :  { %p634_p0 = por %p633_p13, %p632_p12 }
  0x1e   :  { %p635_p1 = pnand %p634_p0, %p628_p11 }
  0x20   :  { %638 = shalt.err (!%p635_p1)
}
  0x21   :  { %29 = dma.hbm_to_vmem [thread:$0]  %s755_s1, 64, %s27_s12, [#allocation6]  }
  0x22   :  { %661 = dma.done.wait [#allocation3], 64  }
  0x23   :  { %662 = vsyncadd [#allocation3], 4294967232 }
  0x24   :  { %663 = dma.done.wait [#allocation6], 64  }
  0x25   :  { %664 = vsyncadd [#allocation6], 4294967232  ;;  %vm321_vm0 = vcmask 1043456   ;;  %v37_v0 = vld [vmem:[#allocation2] sm:$0xf]  ;;  %v669_v18 = vmov 1.0  }
  0x26   :  { %v38_v1 = vld [vmem:[#allocation5] sm:$0xf]  ;;  %281 = vxpose.xlu0.c.b16.start.end [1/1] (short) %v37_v0, 128  ;;  %v39_v2 = vunpack.c.l.bf16 %v37_v0  ;;  %538 = vmatprep.subr.mxu0 %v669_v18  ;;  %vm87_vm2 = vcmask 64512   ;;  %s670_s1 = smov [#allocation7]  }
  0x27   :  { %582 = vmatprep.subr.msk.bf16.mxu1 %vm321_vm0, %v38_v1  ;;  %v323_v3 = vsel %vm321_vm0, %v38_v1, 0  ;;  %539 = vmatpush3.msra.mxu0 %v669_v18  ;;  %s475_s4 = sshll.u32 %s670_s1, 4  ;;  %s476_s4 = int_to_ptr.vmem [resolvable:$true] %s475_s4 }
  0x28   :  { %565 = vmatpush3.bf16.msra.mxu1 %v323_v3  ;;  %v41_v4 = vand.u32 2147483647, %v39_v2  ;;  %v40_v14 = vmax.f32 %v39_v2, 0.0  ;;  %s639_s5 = scalar_lea.vmem %s476_s4, 2048  ;;  %p644_p3 = scmp.lt.s32.totalorder %s476_s4, %s476_s4 }
  0x29   :  { %p640_p2 = scmp.ne.s32.totalorder %s476_s4, %s639_s5  ;;  %p645_p4 = scmp.lt.s32.totalorder %s639_s5, %s639_s5 }
  0x2a   :  { %v42_v5 = vsub.f32 0.0, %v41_v4 }
  0x2b   :  { %p646_p5 = por %p645_p4, %p644_p3 }
  0x2c   :  { %v43_v6 = vmul.f32 1.442695, %v42_v5 }
  0x2d   :  { %p647_p6 = pnand %p646_p5, %p640_p2 }
  0x2e   :  { %591 = vpow2.f32 %v43_v6 }
  0x38   :  { %v592_v7 = vpop.eup %591 }
  0x39   :  { %v45_v8 = vadd.f32 1.0, %v592_v7  ;;  %v48_v9 = vmul.f32 -0.5, %v592_v7  ;;  %v51_v11 = vand.u32 2147483647, %v592_v7 }
  0x3b   :  { %593 = vlog2.f32 %v45_v8  ;;  %v49_v10 = vadd.f32 1.0, %v48_v9  ;;  %vm52_vm1 = vcmp.lt.f32.partialorder %v51_v11, 0.0004427343 }
  0x3d   :  { %v50_v12 = vmul.f32 %v592_v7, %v49_v10 }
  0x45   :  { %v594_v13 = vpop.eup %593 }
  0x46   :  { %v47_v15 = vmul.f32 0.6931472, %v594_v13 }
  0x48   :  { %v53_v16 = vsel %vm52_vm1, %v50_v12, %v47_v15 }
  0x49   :  { %v54_v17 = vadd.f32 %v53_v16, %v40_v14 }
  0x4b   :  { %55 = vxpose.xlu0.b32.start.end [1/1] (short) %v54_v17, 128 }
  0x8c   :  { %v289_v19 = vpop.trf.xlu0 }
  0x8d   :  { %566 = vmatprep.mubr.msk.bf16.mxu1 %vm87_vm2, %v289_v19 }
  0x90   :  { %v290_v20 = vpop.trf.xlu0 }
  0x91   :  { %567 = vmatmul.mubr.msk.bf16.vlgmr.msra.gmra.mrb[0].mxu1 %vm87_vm2, %v290_v20 }
  0x94   :  { %v291_v21 = vpop.trf.xlu0 }
  0x95   :  { %570 = vmatprep.mubr.msk.bf16.mxu1 %vm87_vm2, %v291_v21 }
  0x98   :  { %v292_v22 = vpop.trf.xlu0 }
  0x99   :  { %571 = vmatmul.mubr.msk.bf16.gmra.mrb[4].mxu1 %vm87_vm2, %v292_v22 }
  0x9c   :  { %v293_v23 = vpop.trf.xlu0 }
  0x9d   :  { %574 = vmatprep.mubr.msk.bf16.mxu1 %vm87_vm2, %v293_v23 }
  0xa0   :  { %v294_v24 = vpop.trf.xlu0 }
  0xa1   :  { %575 = vmatmul.mubr.msk.bf16.gmra.mrb[8].mxu1 %vm87_vm2, %v294_v24 }
  0xa4   :  { %v295_v25 = vpop.trf.xlu0 }
  0xa5   :  { %578 = vmatprep.mubr.msk.bf16.mxu1 %vm87_vm2, %v295_v25 }
  0xa8   :  { %v296_v26 = vpop.trf.xlu0 }
  0xa9   :  { %579 = vmatmul.mubr.msk.bf16.gmra.mrb[12].mxu1 %vm87_vm2, %v296_v26 }
  0xcb   :  { %v71_v27 = vpop.trf.xlu0 }
  0xcc   :  { %540 = vmatprep.mubr.msk.f32.mxu0 %vm87_vm2, %v71_v27 }
  0xcf   :  { %v72_v28 = vpop.trf.xlu0 }
  0xd0   :  { %541 = vmatmul.mubr.msk.f32.vlgmr.msra.gmra.mrb[0].mxu0 %vm87_vm2, %v72_v28 }
  0xd3   :  { %v73_v29 = vpop.trf.xlu0 }
  0xd4   :  { %543 = vmatprep.mubr.msk.f32.mxu0 %vm87_vm2, %v73_v29 }
  0xd7   :  { %v74_v30 = vpop.trf.xlu0 }
  0xd8   :  { %544 = vmatmul.mubr.msk.f32.gmra.mrb[2].mxu0 %vm87_vm2, %v74_v30 }
  0xdb   :  { %v75_v31 = vpop.trf.xlu0 }
  0xdc   :  { %546 = vmatprep.mubr.msk.f32.mxu0 %vm87_vm2, %v75_v31 }
  0xdf   :  { %v76_v32 = vpop.trf.xlu0 }
  0xe0   :  { %547 = vmatmul.mubr.msk.f32.gmra.mrb[4].mxu0 %vm87_vm2, %v76_v32 }
  0xe3   :  { %v77_v33 = vpop.trf.xlu0 }
  0xe4   :  { %549 = vmatprep.mubr.msk.f32.mxu0 %vm87_vm2, %v77_v33 }
  0xe7   :  { %v78_v34 = vpop.trf.xlu0 }
  0xe8   :  { %550 = vmatmul.mubr.msk.f32.gmra.mrb[6].mxu0 %vm87_vm2, %v78_v34 }
  0xeb   :  { %v79_v35 = vpop.trf.xlu0 }
  0xec   :  { %552 = vmatprep.mubr.msk.f32.mxu0 %vm87_vm2, %v79_v35 }
  0xef   :  { %v80_v36 = vpop.trf.xlu0 }
  0xf0   :  { %553 = vmatmul.mubr.msk.f32.gmra.mrb[8].mxu0 %vm87_vm2, %v80_v36 }
  0xf3   :  { %v81_v37 = vpop.trf.xlu0 }
  0xf4   :  { %555 = vmatprep.mubr.msk.f32.mxu0 %vm87_vm2, %v81_v37 }
  0xf7   :  { %v82_v38 = vpop.trf.xlu0 }
  0xf8   :  { %556 = vmatmul.mubr.msk.f32.gmra.mrb[10].mxu0 %vm87_vm2, %v82_v38 }
  0xfb   :  { %v83_v39 = vpop.trf.xlu0 }
  0xfc   :  { %558 = vmatprep.mubr.msk.f32.mxu0 %vm87_vm2, %v83_v39 }
  0xff   :  { %v84_v40 = vpop.trf.xlu0 }
 0x100   :  { %559 = vmatmul.mubr.msk.f32.gmra.mrb[12].mxu0 %vm87_vm2, %v84_v40 }
 0x103   :  { %v85_v41 = vpop.trf.xlu0 }
 0x104   :  { %561 = vmatprep.mubr.msk.f32.mxu0 %vm87_vm2, %v85_v41 }
 0x107   :  { %v86_v42 = vpop.trf.xlu0 }
 0x108   :  { %562 = vmatmul.mubr.msk.f32.gmra.mrb[14].mxu0 %vm87_vm2, %v86_v42 }
 0x164   :  { %v568_v43 = vpop.f32.mrb[0].mxu1 }
 0x165   :  { %v359_v44 = vpop.f32.mrb[1].mxu1 }
 0x166   :  { %v569_v45 = vpop.f32.mrb[2].mxu1 }
 0x167   :  { %v362_v46 = vpop.f32.mrb[3].mxu1 }
 0x16c   :  { %v572_v47 = vpop.f32.mrb[4].mxu1 }
 0x16d   :  { %v375_v48 = vpop.f32.mrb[5].mxu1 }
 0x16e   :  { %v573_v49 = vpop.f32.mrb[6].mxu1 }
 0x16f   :  { %v378_v50 = vpop.f32.mrb[7].mxu1 }
 0x174   :  { %v576_v51 = vpop.f32.mrb[8].mxu1 }
 0x175   :  { %v391_v52 = vpop.f32.mrb[9].mxu1 }
 0x176   :  { %v577_v53 = vpop.f32.mrb[10].mxu1 }
 0x177   :  { %v394_v54 = vpop.f32.mrb[11].mxu1 }
 0x17c   :  { %v736_v55 = vpop.f32.mrb[12].mxu1 }
 0x17d   :  { %v407_v56 = vpop.f32.mrb[13].mxu1 }
 0x17e   :  { %v738_v57 = vpop.f32.mrb[14].mxu1 }
 0x17f   :  { %v410_v58 = vpop.f32.mrb[15].mxu1 }
 0x1a3   :  { %v542_v59 = vpop.f32.mrb[0].mxu0 }
 0x1a4   :  { %v423_v60 = vsub.f32 %v542_v59, %v362_v46  ;;  %v202_v61 = vpop.f32.mrb[1].mxu0 }
 0x1a5   :  { %v422_v62 = vsub.f32 %v202_v61, %v359_v44 }
 0x1a6   :  { %v439_v63 = vmul.f32 0.125, %v423_v60 }
 0x1a7   :  { %v438_v0 = vmul.f32 0.125, %v422_v62 }
 0x1a8   :  { %455 = vst [vmem:[#allocation7 + $0x8] sm:$0xff] %v439_v63 }
 0x1a9   :  { %454 = vst [vmem:[#allocation7] sm:$0xff] %v438_v0 }
 0x1ab   :  { %v545_v1 = vpop.f32.mrb[2].mxu0 }
 0x1ac   :  { %v425_v2 = vsub.f32 %v545_v1, %v569_v45  ;;  %v212_v3 = vpop.f32.mrb[3].mxu0 }
 0x1ad   :  { %v424_v4 = vsub.f32 %v212_v3, %v568_v43 }
 0x1ae   :  { %v441_v5 = vmul.f32 0.125, %v425_v2 }
 0x1af   :  { %v440_v6 = vmul.f32 0.125, %v424_v4 }
 0x1b0   :  { %457 = vst [vmem:[#allocation7 + $0x18] sm:$0xff] %v441_v5 }
 0x1b1   :  { %456 = vst [vmem:[#allocation7 + $0x10] sm:$0xff] %v440_v6 }
 0x1b3   :  { %v548_v7 = vpop.f32.mrb[4].mxu0 }
 0x1b4   :  { %v427_v8 = vsub.f32 %v548_v7, %v378_v50  ;;  %v222_v9 = vpop.f32.mrb[5].mxu0 }
 0x1b5   :  { %v426_v10 = vsub.f32 %v222_v9, %v375_v48 }
 0x1b6   :  { %v443_v11 = vmul.f32 0.125, %v427_v8 }
 0x1b7   :  { %v442_v12 = vmul.f32 0.125, %v426_v10 }
 0x1b8   :  { %459 = vst [vmem:[#allocation7 + $0x28] sm:$0xff] %v443_v11 }
 0x1b9   :  { %458 = vst [vmem:[#allocation7 + $0x20] sm:$0xff] %v442_v12 }
 0x1bb   :  { %v551_v13 = vpop.f32.mrb[6].mxu0 }
 0x1bc   :  { %v429_v14 = vsub.f32 %v551_v13, %v573_v49  ;;  %v232_v15 = vpop.f32.mrb[7].mxu0 }
 0x1bd   :  { %v428_v16 = vsub.f32 %v232_v15, %v572_v47 }
 0x1be   :  { %v445_v17 = vmul.f32 0.125, %v429_v14 }
 0x1bf   :  { %v444_v18 = vmul.f32 0.125, %v428_v16 }
 0x1c0   :  { %461 = vst [vmem:[#allocation7 + $0x38] sm:$0xff] %v445_v17 }
 0x1c1   :  { %460 = vst [vmem:[#allocation7 + $0x30] sm:$0xff] %v444_v18 }
 0x1c3   :  { %v554_v19 = vpop.f32.mrb[8].mxu0 }
 0x1c4   :  { %v431_v20 = vsub.f32 %v554_v19, %v394_v54  ;;  %v242_v21 = vpop.f32.mrb[9].mxu0 }
 0x1c5   :  { %v430_v22 = vsub.f32 %v242_v21, %v391_v52 }
 0x1c6   :  { %v447_v23 = vmul.f32 0.125, %v431_v20 }
 0x1c7   :  { %v446_v24 = vmul.f32 0.125, %v430_v22 }
 0x1c8   :  { %463 = vst [vmem:[#allocation7 + $0x48] sm:$0xff] %v447_v23 }
 0x1c9   :  { %462 = vst [vmem:[#allocation7 + $0x40] sm:$0xff] %v446_v24 }
 0x1cb   :  { %v557_v25 = vpop.f32.mrb[10].mxu0 }
 0x1cc   :  { %v433_v26 = vsub.f32 %v557_v25, %v577_v53  ;;  %v252_v27 = vpop.f32.mrb[11].mxu0 }
 0x1cd   :  { %v432_v28 = vsub.f32 %v252_v27, %v576_v51 }
 0x1ce   :  { %v449_v29 = vmul.f32 0.125, %v433_v26 }
 0x1cf   :  { %v448_v30 = vmul.f32 0.125, %v432_v28 }
 0x1d0   :  { %465 = vst [vmem:[#allocation7 + $0x58] sm:$0xff] %v449_v29 }
 0x1d1   :  { %464 = vst [vmem:[#allocation7 + $0x50] sm:$0xff] %v448_v30 }
 0x1d3   :  { %v560_v31 = vpop.f32.mrb[12].mxu0 }
 0x1d4   :  { %v435_v32 = vsub.f32 %v560_v31, %v410_v58  ;;  %v262_v33 = vpop.f32.mrb[13].mxu0 }
 0x1d5   :  { %v434_v34 = vsub.f32 %v262_v33, %v407_v56 }
 0x1d6   :  { %v451_v35 = vmul.f32 0.125, %v435_v32 }
 0x1d7   :  { %v450_v36 = vmul.f32 0.125, %v434_v34 }
 0x1d8   :  { %467 = vst [vmem:[#allocation7 + $0x68] sm:$0xff] %v451_v35 }
 0x1d9   :  { %466 = vst [vmem:[#allocation7 + $0x60] sm:$0xff] %v450_v36 }
 0x1db   :  { %v563_v37 = vpop.f32.mrb[14].mxu0 }
 0x1dc   :  { %v437_v38 = vsub.f32 %v563_v37, %v738_v57  ;;  %v272_v39 = vpop.f32.mrb[15].mxu0 }
 0x1dd   :  { %v436_v40 = vsub.f32 %v272_v39, %v736_v55 }
 0x1de   :  { %v453_v41 = vmul.f32 0.125, %v437_v38 }
 0x1df   :  { %v452_v42 = vmul.f32 0.125, %v436_v40 }
 0x1e0   :  { %469 = vst [vmem:[#allocation7 + $0x78] sm:$0xff] %v453_v41 }
 0x1e1   :  { %468 = vst [vmem:[#allocation7 + $0x70] sm:$0xff] %v452_v42 }
 0x1e2   :  { %650 = shalt.err (!%p647_p6)
}
 0x1e3   :  { %s651_s8 = scalar_lea.hbm %s756_s2, 2048 }
 0x1e4   :  { %p652_p7 = scmp.ne.s32.totalorder %s756_s2, %s651_s8  ;;  %p655_p8 = scmp.lt.u32.totalorder %s651_s8, %s756_s2 }
 0x1e6   :  { %p657_p9 = pnand %p655_p8, %p652_p7 }
 0x1e8   :  { %660 = shalt.err (!%p657_p9)
}
 0x1e9   :  { %s671_s13 = smov 128   ;;  %s672_s14 = smov 8  }
 0x1ea   :  { %481 = dma.vmem_to_hbm [thread:$0]  %s476_s4, 2048, %s756_s2, [#allocation4], %s671_s13, %s671_s13, %s672_s14  }
 0x1eb   :  { %665 = dma.done.wait [#allocation4], 2048  }
 0x1ec   :  { %666 = vsyncadd [#allocation4], 4294965248 }
 0x1ed   :  { %485 = vsyncpa [#allocation3], 1 }
 0x1ee   :  { %486 = vsyncpa [#allocation6], 1 }
 0x1ef   :  { %487 = vsyncpa [#allocation4], 1 }

</bundles_post_ra>
